<compile_context>
chip_gen: v5e
topology: v5e:2x2
jax: 0.10.0
libtpu: 0.0.40
codegen_flags: <defaults>
</compile_context>

<pallas_src>
import jax
import jax.numpy as jnp
from jax.experimental import pallas as pl
from jax.experimental.pallas import tpu as pltpu


def _attention_kernel(x_ref, w1bd_ref, b1_ref, w2bc_ref, aexp_ref, ssum_ref, o_ref):
    # x_ref:    (TB, T*H)   batch block, lane-dense, native dtype
    # w1bd_ref: (T*H, T*H)  block-diagonal W1^T (in x out), resident
    # b1_ref:   (1, T*H)    b1 tiled T times, resident
    # w2bc_ref: (T*H, T)    block-column second-Linear weight, resident
    # aexp_ref: (T, T*H)    one-hot time -> lane-group expansion, resident
    # ssum_ref: (T*H, H)    lane-group -> H segment-sum matrix, resident
    # o_ref:    (TB, H)     output block
    x = x_ref[...]

    # Token MLP for all T positions at once: one full-width MXU matmul + tanh.
    h = jnp.tanh(
        jnp.dot(x, w1bd_ref[...], preferred_element_type=jnp.float32)
        + b1_ref[...].astype(jnp.float32))                            # (TB, T*H) f32

    # Per-time-step attention scores; b2 omitted (softmax is shift-invariant).
    e = jnp.dot(h, w2bc_ref[...], preferred_element_type=jnp.float32)  # (TB, T)

    # Softmax over the time axis.  Exact division (approx reciprocal was the bug).
    e = e - jnp.max(e, axis=-1, keepdims=True)
    p = jnp.exp(e)
    a = p / jnp.sum(p, axis=-1, keepdims=True)                        # (TB, T)

    # Broadcast a over each time step's H lanes (one-hot expansion matmul),
    # weight x, then segment-sum the T lane-groups back down to H.
    a_lanes = jnp.dot(a, aexp_ref[...], preferred_element_type=jnp.float32)  # (TB, T*H)
    weighted = a_lanes * x.astype(jnp.float32)                        # (TB, T*H)
    out = jnp.dot(weighted, ssum_ref[...], preferred_element_type=jnp.float32)  # (TB, H)
    o_ref[...] = out.astype(o_ref.dtype)


def _choose_tb(batch, target=512):
    """Pick the batch-block size.

    * batch <= 8: one full-extent block (block dim == array dim is always legal).
    * otherwise: a multiple of 8, capped at `target`, and at most ~ceil(B/2) so
      there are >= 2 grid blocks (lets the 'parallel' axis shard across v7x's
      two TensorCores).
    """
    if batch <= 8:
        return batch
    half = (batch + 1) // 2
    tb = min(target, ((half + 7) // 8) * 8)
    return max(8, tb)


def attention_layer(lstm_output, w1, b1, w2, b2, tb=None):
    """Pallas TPU forward of AttentionLayer.

    lstm_output: (B, T, H); w1: (H, H); b1: (H,); w2: (1, H); b2: (1,).
    Returns (B, H).  b2 is accepted for API parity but unused: softmax is
    shift-invariant so a scalar bias on every score cannot change the output.
    """
    del b2  # mathematically irrelevant under the softmax
    B, T, H = lstm_output.shape
    TH = T * H

    if tb is None:
        tb = _choose_tb(B)
    n_blocks = pl.cdiv(B, tb)

    # Lane-dense view of the input (row-major reshape: free, no HBM copy).
    x2 = lstm_output.reshape(B, TH)

    # One-time structured weight prep (tiny, outside the kernel).
    f32 = jnp.float32
    eye_t = jnp.eye(T, dtype=w1.dtype)
    w1bd = jnp.kron(eye_t, jnp.transpose(w1))                       # (TH, TH)
    b1t = jnp.tile(b1, T).reshape(1, TH)                            # (1, TH)
    w2bc = jnp.kron(eye_t, w2.reshape(H, 1))                        # (TH, T)
    aexp = jnp.kron(jnp.eye(T, dtype=f32), jnp.ones((1, H), f32))   # (T, TH)
    ssum = jnp.kron(jnp.ones((T, 1), f32), jnp.eye(H, dtype=f32))   # (TH, H)

    out = pl.pallas_call(
        _attention_kernel,
        out_shape=jax.ShapeDtypeStruct((B, H), lstm_output.dtype),
        grid_spec=pltpu.PrefetchScalarGridSpec(
            num_scalar_prefetch=0,
            grid=(n_blocks,),
            in_specs=[
                pl.BlockSpec((tb, TH), lambda i: (i, 0)),    # x block (lane-dense)
                pl.BlockSpec((TH, TH), lambda i: (0, 0)),    # block-diagonal W1^T
                pl.BlockSpec((1, TH), lambda i: (0, 0)),     # b1 tiled
                pl.BlockSpec((TH, T), lambda i: (0, 0)),     # block-column W2
                pl.BlockSpec((T, TH), lambda i: (0, 0)),     # time -> lane expand
                pl.BlockSpec((TH, H), lambda i: (0, 0)),     # lane-group -> H sum
            ],
            out_specs=pl.BlockSpec((tb, H), lambda i: (i, 0)),
        ),
        compiler_params=pltpu.CompilerParams(
            dimension_semantics=("parallel",),
        ),
    )(x2, w1bd, b1t, w2bc, aexp, ssum)
    return out


def _reference(lstm_output, w1, b1, w2, b2):
    # Pure-JAX reference mirroring the PyTorch module exactly (high precision so
    # the comparison is against true-f32 math on any backend).
    hp = jax.lax.Precision.HIGHEST
    h = jnp.tanh(jnp.einsum("bth,oh->bto", lstm_output, w1, precision=hp) + b1)
    e = jnp.einsum("bth,oh->bto", h, w2, precision=hp) + b2         # (B, T, 1)
    a = jax.nn.softmax(e, axis=1)
    return jnp.sum(a * lstm_output, axis=1)                         # (B, H)


if __name__ == "__main__":
    T, H = 8, 32
    key = jax.random.PRNGKey(0)
    kx, k1, k2, k3, k4, kx2 = jax.random.split(key, 6)

    # Deterministic parameter init (PyTorch Linear layout: W is (out, in)).
    bound1 = 1.0 / (H ** 0.5)
    w1 = jax.random.uniform(k1, (H, H), jnp.float32, -bound1, bound1)
    b1 = jax.random.uniform(k2, (H,), jnp.float32, -bound1, bound1)
    w2 = jax.random.uniform(k3, (1, H), jnp.float32, -bound1, bound1)
    b2 = jax.random.uniform(k4, (1,), jnp.float32, -bound1, bound1)

    # Small case (single full-extent block).
    B = 2
    lstm_output = jax.random.normal(kx, (B, T, H), dtype=jnp.float32)
    out = jax.block_until_ready(attention_layer(lstm_output, w1, b1, w2, b2))
    ref = _reference(lstm_output, w1, b1, w2, b2)
    assert out.shape == (B, H)
    assert jnp.allclose(out, ref, atol=5e-4, rtol=5e-4), (out, ref)

    # Larger case: two-block "parallel" grid, no host-side padding.
    B2 = 48
    lstm_output2 = jax.random.normal(kx2, (B2, T, H), dtype=jnp.float32)
    out2 = jax.block_until_ready(attention_layer(lstm_output2, w1, b1, w2, b2))
    ref2 = _reference(lstm_output2, w1, b1, w2, b2)
    assert out2.shape == (B2, H)
    assert jnp.allclose(out2, ref2, atol=5e-4, rtol=5e-4), (out2, ref2)

    print("KERNEL_OK")
</pallas_src>

<mosaic_0001>
module attributes {stable_mosaic.version = 11 : i64} {
  func.func @_attention_kernel(%arg0: i32, %arg1: memref<2x256xf32, #tpu.memory_space<vmem>>, %arg2: memref<256x256xf32, #tpu.memory_space<vmem>>, %arg3: memref<1x256xf32, #tpu.memory_space<vmem>>, %arg4: memref<256x8xf32, #tpu.memory_space<vmem>>, %arg5: memref<8x256xf32, #tpu.memory_space<vmem>>, %arg6: memref<256x32xf32, #tpu.memory_space<vmem>>, %arg7: memref<2x32xf32, #tpu.memory_space<vmem>>) attributes {dimension_semantics = [#tpu.dimension_semantics<parallel>], iteration_bounds = array<i64: 1>, scalar_prefetch = 0 : i64, scratch_operands = 0 : i64, tpu.core_type = #tpu.core_type<tc>, window_params = [{transform_indices = @transform_0, window_bounds = array<i64: 2, 256>}, {pipeline_mode = #tpu.pipeline_mode<synchronous>, transform_indices = @transform_1, window_bounds = array<i64: 256, 256>}, {pipeline_mode = #tpu.pipeline_mode<synchronous>, transform_indices = @transform_2, window_bounds = array<i64: 1, 256>}, {pipeline_mode = #tpu.pipeline_mode<synchronous>, transform_indices = @transform_3, window_bounds = array<i64: 256, 8>}, {pipeline_mode = #tpu.pipeline_mode<synchronous>, transform_indices = @transform_4, window_bounds = array<i64: 8, 256>}, {pipeline_mode = #tpu.pipeline_mode<synchronous>, transform_indices = @transform_5, window_bounds = array<i64: 256, 32>}, {transform_indices = @transform_6, window_bounds = array<i64: 2, 32>}]} {
    %c0 = arith.constant 0 : index
    %c0_0 = arith.constant 0 : index
    %0 = vector.load %arg1[%c0, %c0_0] : memref<2x256xf32, #tpu.memory_space<vmem>>, vector<2x256xf32>
    %c0_1 = arith.constant 0 : index
    %c0_2 = arith.constant 0 : index
    %1 = vector.load %arg2[%c0_1, %c0_2] : memref<256x256xf32, #tpu.memory_space<vmem>>, vector<256x256xf32>
    %cst = arith.constant dense<0.000000e+00> : vector<2x256xf32>
    %2 = tpu.matmul %0, %1, %cst {dimension_numbers = #tpu.dot_dimension_numbers<[1], [0], [0], [1], [0, 0, 1, 1], [], []>} : vector<2x256xf32>, vector<256x256xf32>, vector<2x256xf32> -> vector<2x256xf32>
    %c0_3 = arith.constant 0 : index
    %c0_4 = arith.constant 0 : index
    %3 = vector.load %arg3[%c0_3, %c0_4] : memref<1x256xf32, #tpu.memory_space<vmem>>, vector<1x256xf32>
    %4 = vector.broadcast %3 : vector<1x256xf32> to vector<2x256xf32>
    %5 = arith.addf %2, %4 : vector<2x256xf32>
    %6 = math.tanh %5 : vector<2x256xf32>
    %c0_5 = arith.constant 0 : index
    %c0_6 = arith.constant 0 : index
    %7 = vector.load %arg4[%c0_5, %c0_6] : memref<256x8xf32, #tpu.memory_space<vmem>>, vector<256x8xf32>
    %cst_7 = arith.constant dense<0.000000e+00> : vector<2x8xf32>
    %8 = tpu.matmul %6, %7, %cst_7 {dimension_numbers = #tpu.dot_dimension_numbers<[1], [0], [0], [1], [0, 0, 1, 1], [], []>} : vector<2x256xf32>, vector<256x8xf32>, vector<2x8xf32> -> vector<2x8xf32>
    %cst_8 = arith.constant dense<0xFF800000> : vector<2xf32>
    %9 = vector.multi_reduction <maximumf>, %8, %cst_8 [1] : vector<2x8xf32> to vector<2xf32>
    %10 = vector.shape_cast %9 : vector<2xf32> to vector<2x1xf32>
    %11 = vector.broadcast %10 : vector<2x1xf32> to vector<2x8xf32>
    %12 = arith.subf %8, %11 : vector<2x8xf32>
    %13 = math.exp %12 : vector<2x8xf32>
    %cst_9 = arith.constant dense<0.000000e+00> : vector<2xf32>
    %14 = vector.multi_reduction <add>, %13, %cst_9 [1] : vector<2x8xf32> to vector<2xf32>
    %15 = vector.shape_cast %14 : vector<2xf32> to vector<2x1xf32>
    %16 = vector.broadcast %15 : vector<2x1xf32> to vector<2x8xf32>
    %17 = arith.divf %13, %16 : vector<2x8xf32>
    %c0_10 = arith.constant 0 : index
    %c0_11 = arith.constant 0 : index
    %18 = vector.load %arg5[%c0_10, %c0_11] : memref<8x256xf32, #tpu.memory_space<vmem>>, vector<8x256xf32>
    %cst_12 = arith.constant dense<0.000000e+00> : vector<2x256xf32>
    %19 = tpu.matmul %17, %18, %cst_12 {dimension_numbers = #tpu.dot_dimension_numbers<[1], [0], [0], [1], [0, 0, 1, 1], [], []>} : vector<2x8xf32>, vector<8x256xf32>, vector<2x256xf32> -> vector<2x256xf32>
    %20 = arith.mulf %19, %0 : vector<2x256xf32>
    %c0_13 = arith.constant 0 : index
    %c0_14 = arith.constant 0 : index
    %21 = vector.load %arg6[%c0_13, %c0_14] : memref<256x32xf32, #tpu.memory_space<vmem>>, vector<256x32xf32>
    %cst_15 = arith.constant dense<0.000000e+00> : vector<2x32xf32>
    %22 = tpu.matmul %20, %21, %cst_15 {dimension_numbers = #tpu.dot_dimension_numbers<[1], [0], [0], [1], [0, 0, 1, 1], [], []>} : vector<2x256xf32>, vector<256x32xf32>, vector<2x32xf32> -> vector<2x32xf32>
    %c0_16 = arith.constant 0 : index
    %c0_17 = arith.constant 0 : index
    %23 = vector.load %arg7[%c0_16, %c0_17] : memref<2x32xf32, #tpu.memory_space<vmem>>, vector<2x32xf32>
    tpu.vector_store %arg7[%c0_16, %c0_17], %22 {strides = array<i32>} : memref<2x32xf32, #tpu.memory_space<vmem>>, vector<2x32xf32>,
    return
  }
  func.func @transform_0(%arg0: i32) -> (i32, i32) {
    %c0_i32 = arith.constant 0 : i32
    %c0_i32_0 = arith.constant 0 : i32
    return %arg0, %c0_i32 : i32, i32
  }
  func.func @transform_1(%arg0: i32) -> (i32, i32) {
    %c0_i32 = arith.constant 0 : i32
    %c0_i32_0 = arith.constant 0 : i32
    %c0_i32_1 = arith.constant 0 : i32
    return %c0_i32, %c0_i32_0 : i32, i32
  }
  func.func @transform_2(%arg0: i32) -> (i32, i32) {
    %c0_i32 = arith.constant 0 : i32
    %c0_i32_0 = arith.constant 0 : i32
    %c0_i32_1 = arith.constant 0 : i32
    return %c0_i32, %c0_i32_0 : i32, i32
  }
  func.func @transform_3(%arg0: i32) -> (i32, i32) {
    %c0_i32 = arith.constant 0 : i32
    %c0_i32_0 = arith.constant 0 : i32
    %c0_i32_1 = arith.constant 0 : i32
    return %c0_i32, %c0_i32_0 : i32, i32
  }
  func.func @transform_4(%arg0: i32) -> (i32, i32) {
    %c0_i32 = arith.constant 0 : i32
    %c0_i32_0 = arith.constant 0 : i32
    %c0_i32_1 = arith.constant 0 : i32
    return %c0_i32, %c0_i32_0 : i32, i32
  }
  func.func @transform_5(%arg0: i32) -> (i32, i32) {
    %c0_i32 = arith.constant 0 : i32
    %c0_i32_0 = arith.constant 0 : i32
    %c0_i32_1 = arith.constant 0 : i32
    return %c0_i32, %c0_i32_0 : i32, i32
  }
  func.func @transform_6(%arg0: i32) -> (i32, i32) {
    %c0_i32 = arith.constant 0 : i32
    %c0_i32_0 = arith.constant 0 : i32
    return %arg0, %c0_i32 : i32, i32
  }
}

</mosaic_0001>

<bundles_post_ra>
// kernel: tpu_custom_call.1
= control target key start
LH: loop header
LB: loop body
LE: loop exit
PB: predicated region body
PF: predicated region fallthrough
CT: control target
= control target key end

     0   :  { %11 = vsyncpa [#allocation3], 0  ;;  %s985_s0 = inlined_call_operand.hbm [shape: f32[2,256], index: 0, kind: input, shape index: {}]   ;;  %s986_s1 = inlined_call_operand.vmem [shape: f32[256,256], index: 1, kind: input, shape index: {}]   ;;  %s987_s2 = inlined_call_operand.hbm [shape: f32[1,256], index: 2, kind: input, shape index: {}]   ;;  %s988_s3 = inlined_call_operand.vmem [shape: f32[256,8], index: 3, kind: input, shape index: {}]   ;;  %s989_s4 = inlined_call_operand.vmem [shape: f32[8,256], index: 4, kind: input, shape index: {}]   ;;  %s990_s5 = inlined_call_operand.vmem [shape: f32[256,32], index: 5, kind: input, shape index: {}]   ;;  %s991_s6 = inlined_call_operand.hbm [shape: f32[2,32], index: 6, kind: output, shape index: {}]  }
   0x1   :  { %12 = vsyncpa [#allocation6], 0 }
   0x2   :  { %13 = vsyncpa [#allocation4], 0  ;;  %s19_s23 = sshll.u32 %s985_s0, 4  ;;  %s544_s24 = smov [#allocation2]   ;;  %s20_s23 = int_to_ptr.hbm [resolvable:$true] %s19_s23 }
   0x3   :  { %s21_s25 = sshll.u32 %s544_s24, 4  ;;  %s32_s28 = sshll.u32 %s987_s2, 4  ;;  %s22_s25 = int_to_ptr.vmem [resolvable:$true] %s21_s25  ;;  %s33_s28 = int_to_ptr.hbm [resolvable:$true] %s32_s28 }
   0x4   :  { %24 = dma.hbm_to_vmem [thread:$0]  %s20_s23, 64, %s22_s25, [#allocation3]  }
   0x5   :  { %s545_s29 = smov [#allocation5]  }
   0x6   :  { %s34_s30 = sshll.u32 %s545_s29, 4  ;;  %s35_s30 = int_to_ptr.vmem [resolvable:$true] %s34_s30 }
   0x7   :  { %37 = dma.hbm_to_vmem [thread:$0]  %s33_s28, 32, %s35_s30, [#allocation6]  }
   0x8   :  { %538 = dma.done.wait [#allocation3], 64  }
   0x9   :  { %539 = vsyncadd [#allocation3], 4294967232 }
   0xa   :  { %540 = dma.done.wait [#allocation6], 32  }
   0xb   :  { %541 = vsyncadd [#allocation6], 4294967264  ;;  %v84_v0 = vld [vmem:[%s986_s1 + $0xf8] sm:$0xff]  ;;  %v82_v1 = vld [vmem:[%s986_s1 + $0xe8] sm:$0xff]  ;;  %vm283_vm0 = vcmask 58368   ;;  %vm310_vm5 = vcmask 64512  }
   0xc   :  { %v116_v2 = vld [vmem:[%s986_s1 + $0x1f8] sm:$0xff]  ;;  %169 = vmatpush.msra.mxu2 %v84_v0  ;;  %v114_v3 = vld [vmem:[%s986_s1 + $0x1e8] sm:$0xff]  ;;  %v83_v4 = vld [vmem:[%s986_s1 + $0xf0] sm:$0xff]  ;;  %s546_s21 = smov [#allocation7]   ;;  %s442_s24 = sshll.u32 %s991_s6, 4  ;;  %vm433_vm6 = vcmask 254976   ;;  %s443_s24 = int_to_ptr.hbm [resolvable:$true] %s442_s24 }
   0xd   :  { %189 = vmatpush.msra.mxu3 %v116_v2  ;;  %v80_v5 = vld [vmem:[%s986_s1 + $0xd8] sm:$0xff]  ;;  %129 = vmatpush.msra.mxu0 %v83_v4  ;;  %v81_v7 = vld [vmem:[%s986_s1 + $0xe0] sm:$0xff]  ;;  %v78_v8 = vld [vmem:[%s986_s1 + $0xc8] sm:$0xff]  ;;  %s440_s22 = sshll.u32 %s546_s21, 4  ;;  %s441_s22 = int_to_ptr.vmem [resolvable:$true] %s440_s22 }
   0xe   :  { %v112_v6 = vld [vmem:[%s986_s1 + $0x1d8] sm:$0xff]  ;;  %170 = vmatpush.msra.mxu2 %v82_v1  ;;  %v115_v9 = vld [vmem:[%s986_s1 + $0x1f0] sm:$0xff]  ;;  %v110_v10 = vld [vmem:[%s986_s1 + $0x1c8] sm:$0xff] }
   0xf   :  { %190 = vmatpush.msra.mxu3 %v114_v3  ;;  %130 = vmatpush.msra.mxu0 %v81_v7  ;;  %v79_v11 = vld [vmem:[%s986_s1 + $0xd0] sm:$0xff]  ;;  %v113_v12 = vld [vmem:[%s986_s1 + $0x1e0] sm:$0xff]  ;;  %v76_v15 = vld [vmem:[%s986_s1 + $0xb8] sm:$0xff] }
  0x10   :  { %149 = vmatpush.msra.mxu1 %v115_v9  ;;  %171 = vmatpush.msra.mxu2 %v80_v5  ;;  %v77_v13 = vld [vmem:[%s986_s1 + $0xc0] sm:$0xff]  ;;  %v111_v14 = vld [vmem:[%s986_s1 + $0x1d0] sm:$0xff]  ;;  %v108_v16 = vld [vmem:[%s986_s1 + $0x1b8] sm:$0xff] }
  0x11   :  { %191 = vmatpush.msra.mxu3 %v112_v6  ;;  %131 = vmatpush.msra.mxu0 %v79_v11  ;;  %v75_v17 = vld [vmem:[%s986_s1 + $0xb0] sm:$0xff]  ;;  %v109_v18 = vld [vmem:[%s986_s1 + $0x1c0] sm:$0xff]  ;;  %v74_v19 = vld [vmem:[%s986_s1 + $0xa8] sm:$0xff] }
  0x12   :  { %150 = vmatpush.msra.mxu1 %v113_v12  ;;  %172 = vmatpush.msra.mxu2 %v78_v8  ;;  %v106_v20 = vld [vmem:[%s986_s1 + $0x1a8] sm:$0xff]  ;;  %v73_v21 = vld [vmem:[%s986_s1 + $0xa0] sm:$0xff]  ;;  %v107_v22 = vld [vmem:[%s986_s1 + $0x1b0] sm:$0xff] }
  0x13   :  { %192 = vmatpush.msra.mxu3 %v110_v10  ;;  %132 = vmatpush.msra.mxu0 %v77_v13  ;;  %v72_v23 = vld [vmem:[%s986_s1 + $0x98] sm:$0xff]  ;;  %v71_v25 = vld [vmem:[%s986_s1 + $0x90] sm:$0xff]  ;;  %v105_v26 = vld [vmem:[%s986_s1 + $0x1a0] sm:$0xff] }
  0x14   :  { %151 = vmatpush.msra.mxu1 %v111_v14  ;;  %173 = vmatpush.msra.mxu2 %v76_v15  ;;  %v104_v24 = vld [vmem:[%s986_s1 + $0x198] sm:$0xff]  ;;  %v70_v27 = vld [vmem:[%s986_s1 + $0x88] sm:$0xff]  ;;  %v69_v29 = vld [vmem:[%s986_s1 + $0x80] sm:$0xff] }
  0x15   :  { %193 = vmatpush.msra.mxu3 %v108_v16  ;;  %133 = vmatpush.msra.mxu0 %v75_v17  ;;  %v102_v28 = vld [vmem:[%s986_s1 + $0x188] sm:$0xff]  ;;  %v103_v30 = vld [vmem:[%s986_s1 + $0x190] sm:$0xff]  ;;  %v68_v31 = vld [vmem:[%s986_s1 + $0x78] sm:$0xff] }
  0x16   :  { %152 = vmatpush.msra.mxu1 %v109_v18  ;;  %174 = vmatpush.msra.mxu2 %v74_v19  ;;  %v100_v32 = vld [vmem:[%s986_s1 + $0x178] sm:$0xff]  ;;  %v67_v33 = vld [vmem:[%s986_s1 + $0x70] sm:$0xff]  ;;  %v101_v34 = vld [vmem:[%s986_s1 + $0x180] sm:$0xff] }
  0x17   :  { %194 = vmatpush.msra.mxu3 %v106_v20  ;;  %134 = vmatpush.msra.mxu0 %v73_v21  ;;  %v66_v35 = vld [vmem:[%s986_s1 + $0x68] sm:$0xff]  ;;  %v65_v37 = vld [vmem:[%s986_s1 + $0x60] sm:$0xff]  ;;  %v99_v38 = vld [vmem:[%s986_s1 + $0x170] sm:$0xff] }
  0x18   :  { %153 = vmatpush.msra.mxu1 %v107_v22  ;;  %175 = vmatpush.msra.mxu2 %v72_v23  ;;  %v98_v36 = vld [vmem:[%s986_s1 + $0x168] sm:$0xff]  ;;  %v64_v39 = vld [vmem:[%s986_s1 + $0x58] sm:$0xff]  ;;  %v63_v42 = vld [vmem:[%s986_s1 + $0x50] sm:$0xff] }
  0x19   :  { %195 = vmatpush.msra.mxu3 %v104_v24  ;;  %135 = vmatpush.msra.mxu0 %v71_v25  ;;  %v96_v40 = vld [vmem:[%s986_s1 + $0x158] sm:$0xff]  ;;  %v52_v41 = vld [vmem:[#allocation2] sm:$0xf]  ;;  %v97_v43 = vld [vmem:[%s986_s1 + $0x160] sm:$0xff] }
  0x1a   :  { %154 = vmatpush.msra.mxu1 %v105_v26  ;;  %176 = vmatpush.msra.mxu2 %v70_v27  ;;  %124 = vst [vmem:[#allocation1] ss:$4 sm:$0xff] %v52_v41  ;;  %v62_v44 = vld [vmem:[%s986_s1 + $0x48] sm:$0xff]  ;;  %v61_v46 = vld [vmem:[%s986_s1 + $0x40] sm:$0xff]  ;;  %v95_v47 = vld [vmem:[%s986_s1 + $0x150] sm:$0xff] }
  0x1b   :  { %196 = vmatpush.msra.mxu3 %v102_v28  ;;  %136 = vmatpush.msra.mxu0 %v69_v29  ;;  %v94_v45 = vld [vmem:[%s986_s1 + $0x148] sm:$0xff]  ;;  %v60_v48 = vld [vmem:[%s986_s1 + $0x38] sm:$0xff]  ;;  %v59_v50 = vld [vmem:[%s986_s1 + $0x30] sm:$0xff] }
  0x1c   :  { %155 = vmatpush.msra.mxu1 %v103_v30  ;;  %177 = vmatpush.msra.mxu2 %v68_v31  ;;  %v92_v49 = vld [vmem:[%s986_s1 + $0x138] sm:$0xff]  ;;  %v93_v51 = vld [vmem:[%s986_s1 + $0x140] sm:$0xff]  ;;  %v58_v52 = vld [vmem:[%s986_s1 + $0x28] sm:$0xff] }
  0x1d   :  { %197 = vmatpush.msra.mxu3 %v100_v32  ;;  %137 = vmatpush.msra.mxu0 %v67_v33  ;;  %v56_v53 = vld [vmem:[%s986_s1 + $0x18] sm:$0xff]  ;;  %v90_v54 = vld [vmem:[%s986_s1 + $0x128] sm:$0xff]  ;;  %v57_v56 = vld [vmem:[%s986_s1 + $0x20] sm:$0xff] }
  0x1e   :  { %156 = vmatpush.msra.mxu1 %v101_v34  ;;  %178 = vmatpush.msra.mxu2 %v66_v35  ;;  %v88_v55 = vld [vmem:[%s986_s1 + $0x118] sm:$0xff]  ;;  %v91_v57 = vld [vmem:[%s986_s1 + $0x130] sm:$0xff]  ;;  %v89_v61 = vld [vmem:[%s986_s1 + $0x120] sm:$0xff] }
  0x1f   :  { %198 = vmatpush.msra.mxu3 %v98_v36  ;;  %138 = vmatpush.msra.mxu0 %v65_v37  ;;  %v55_v60 = vld [vmem:[%s986_s1 + $0x10] sm:$0xff]  ;;  %v54_v62 = vld [vmem:[%s986_s1 + $0x8] sm:$0xff]  ;;  %v53_v0 = vld [vmem:[%s986_s1] sm:$0xff] }
  0x20   :  { %157 = vmatpush.msra.mxu1 %v99_v38  ;;  %179 = vmatpush.msra.mxu2 %v64_v39  ;;  %v86_v63 = vld [vmem:[%s986_s1 + $0x108] sm:$0xff]  ;;  %v87_v1 = vld [vmem:[%s986_s1 + $0x110] sm:$0xff]  ;;  %v85_v2 = vld [vmem:[%s986_s1 + $0x100] sm:$0xff] }
  0x21   :  { %199 = vmatpush.msra.mxu3 %v96_v40  ;;  %139 = vmatpush.msra.mxu0 %v63_v42  ;;  %v125_v58 = vld.sshfl [vmem:[#allocation1] sm:$0xff pattern:$0x73625140]  ;;  %v126_v59 = vld.sshfl [vmem:[#allocation1 + $0x8] sm:$0xff pattern:$0x73625140] }
  0x22   :  { %158 = vmatpush.msra.mxu1 %v97_v43  ;;  %180 = vmatpush.msra.mxu2 %v62_v44  ;;  %354 = vst [vmem:[#allocation1] ss:$4 sm:$0xff] %v52_v41  ;;  %v226_v3 = vld [vmem:[%s988_s3 + $0x78] sm:$0xff]  ;;  %v225_v5 = vld [vmem:[%s988_s3 + $0x70] sm:$0xff]  ;;  %v224_v7 = vld [vmem:[%s988_s3 + $0x68] sm:$0xff] }
  0x23   :  { %200 = vmatpush.msra.mxu3 %v94_v45  ;;  %140 = vmatpush.msra.mxu0 %v61_v46  ;;  %v242_v4 = vld [vmem:[%s988_s3 + $0xf8] sm:$0xff]  ;;  %v241_v6 = vld [vmem:[%s988_s3 + $0xf0] sm:$0xff]  ;;  %v240_v8 = vld [vmem:[%s988_s3 + $0xe8] sm:$0xff] }
  0x24   :  { %159 = vmatpush.msra.mxu1 %v95_v47  ;;  %181 = vmatpush.msra.mxu2 %v60_v48  ;;  %v223_v9 = vld [vmem:[%s988_s3 + $0x60] sm:$0xff]  ;;  %v222_v11 = vld [vmem:[%s988_s3 + $0x58] sm:$0xff]  ;;  %v221_v13 = vld [vmem:[%s988_s3 + $0x50] sm:$0xff] }
  0x25   :  { %201 = vmatpush.msra.mxu3 %v92_v49  ;;  %141 = vmatpush.msra.mxu0 %v59_v50  ;;  %v239_v10 = vld [vmem:[%s988_s3 + $0xe0] sm:$0xff]  ;;  %v238_v12 = vld [vmem:[%s988_s3 + $0xd8] sm:$0xff]  ;;  %v237_v14 = vld [vmem:[%s988_s3 + $0xd0] sm:$0xff] }
  0x26   :  { %160 = vmatpush.msra.mxu1 %v93_v51  ;;  %182 = vmatpush.msra.mxu2 %v58_v52  ;;  %v220_v15 = vld [vmem:[%s988_s3 + $0x48] sm:$0xff]  ;;  %v219_v17 = vld [vmem:[%s988_s3 + $0x40] sm:$0xff]  ;;  %v218_v19 = vld [vmem:[%s988_s3 + $0x38] sm:$0xff] }
  0x27   :  { %202 = vmatpush.msra.mxu3 %v90_v54  ;;  %142 = vmatpush.msra.mxu0 %v57_v56  ;;  %v236_v16 = vld [vmem:[%s988_s3 + $0xc8] sm:$0xff]  ;;  %v235_v18 = vld [vmem:[%s988_s3 + $0xc0] sm:$0xff]  ;;  %v234_v20 = vld [vmem:[%s988_s3 + $0xb8] sm:$0xff] }
  0x28   :  { %161 = vmatpush.msra.mxu1 %v91_v57  ;;  %183 = vmatpush.msra.mxu2 %v56_v53  ;;  %v217_v21 = vld [vmem:[%s988_s3 + $0x30] sm:$0xff]  ;;  %v216_v23 = vld [vmem:[%s988_s3 + $0x28] sm:$0xff]  ;;  %v215_v25 = vld [vmem:[%s988_s3 + $0x20] sm:$0xff] }
  0x29   :  { %203 = vmatpush.msra.mxu3 %v88_v55  ;;  %143 = vmatpush.msra.mxu0 %v55_v60  ;;  %v233_v22 = vld [vmem:[%s988_s3 + $0xb0] sm:$0xff]  ;;  %v232_v24 = vld [vmem:[%s988_s3 + $0xa8] sm:$0xff]  ;;  %v231_v26 = vld [vmem:[%s988_s3 + $0xa0] sm:$0xff] }
  0x2a   :  { %162 = vmatpush.msra.mxu1 %v89_v61  ;;  %184 = vmatpush.msra.mxu2 %v54_v62  ;;  %v214_v27 = vld [vmem:[%s988_s3 + $0x18] sm:$0xff]  ;;  %v213_v29 = vld [vmem:[%s988_s3 + $0x10] sm:$0xff]  ;;  %v212_v31 = vld [vmem:[%s988_s3 + $0x8] sm:$0xff] }
  0x2b   :  { %204 = vmatpush.msra.mxu3 %v86_v63  ;;  %185 = vmatmul.f32.vlgmr.msra.gmra.mxu2 %v125_v58  ;;  %v230_v28 = vld [vmem:[%s988_s3 + $0x98] sm:$0xff]  ;;  %v229_v30 = vld [vmem:[%s988_s3 + $0x90] sm:$0xff]  ;;  %v228_v32 = vld [vmem:[%s988_s3 + $0x88] sm:$0xff] }
  0x2c   :  { %205 = vmatmul.f32.vlgmr.msra.gmra.mxu3 %v126_v59  ;;  %144 = vmatpush.msra.mxu0 %v53_v0  ;;  %v211_v33 = vld [vmem:[%s988_s3] sm:$0xff]  ;;  %v117_v35 = vld [vmem:[#allocation5] sm:$0x3]  ;;  %v392_v60 = vld [vmem:[%s990_s5 + $0xf8] sm:$0xff] }
  0x2d   :  { %163 = vmatpush.msra.mxu1 %v87_v1  ;;  %145 = vmatmul.f32.vlgmr.msra.gmra.mxu0 %v125_v58  ;;  %v227_v34 = vld [vmem:[%s988_s3 + $0x80] sm:$0xff]  ;;  %v119_v36 = vperm.slane %v117_v35, 0  ;;  %v120_v39 = vperm.slane %v117_v35, 1  ;;  %v309_v58 = vld [vmem:[%s989_s4 + $0x8] sm:$0xff]  ;;  %v375_v61 = vld [vmem:[%s990_s5 + $0x70] sm:$0xff] }
  0x2e   :  { %243 = vmatpush.msrb.mxu0 %v226_v3  ;;  %v308_v57 = vld [vmem:[%s989_s4] sm:$0xff]  ;;  %349 = vmatpush.msrb.mxu3 %v309_v58  ;;  %v391_v62 = vld [vmem:[%s990_s5 + $0xf0] sm:$0xff]  ;;  %v374_v63 = vld [vmem:[%s990_s5 + $0x68] sm:$0xff] }
  0x2f   :  { %164 = vmatpush.msra.mxu1 %v85_v2  ;;  %329 = vmatpush.msrb.mxu2 %v308_v57  ;;  %v390_v0 = vld [vmem:[%s990_s5 + $0xe8] sm:$0xff]  ;;  %v373_v1 = vld [vmem:[%s990_s5 + $0x60] sm:$0xff]  ;;  %v372_v3 = vld [vmem:[%s990_s5 + $0x58] sm:$0xff] }
  0x30   :  { %165 = vmatmul.f32.vlgmr.msra.gmra.mxu1 %v126_v59  ;;  %244 = vmatpush.msrb.mxu0 %v225_v5  ;;  %v376_v59 = vld [vmem:[%s990_s5 + $0x78] sm:$0xff]  ;;  %v389_v2 = vld [vmem:[%s990_s5 + $0xe0] sm:$0xff]  ;;  %v371_v5 = vld [vmem:[%s990_s5 + $0x50] sm:$0xff] }
  0x31   :  { %263 = vmatpush.msrb.mxu1 %v242_v4  ;;  %393 = vmatpush.msra.mxu2 %v376_v59  ;;  %v388_v4 = vld [vmem:[%s990_s5 + $0xd8] sm:$0xff]  ;;  %v362_v35 = vld [vmem:[%s990_s5 + $0x8] sm:$0xff] }
  0x32   :  { %245 = vmatpush.msrb.mxu0 %v224_v7  ;;  %413 = vmatpush.msra.mxu3 %v392_v60  ;;  %v370_v7 = vld [vmem:[%s990_s5 + $0x48] sm:$0xff] }
  0x33   :  { %264 = vmatpush.msrb.mxu1 %v241_v6  ;;  %394 = vmatpush.msra.mxu2 %v375_v61  ;;  %v387_v6 = vld [vmem:[%s990_s5 + $0xd0] sm:$0xff] }
  0x34   :  { %246 = vmatpush.msrb.mxu0 %v223_v9  ;;  %414 = vmatpush.msra.mxu3 %v391_v62 }
  0x35   :  { %265 = vmatpush.msrb.mxu1 %v240_v8  ;;  %395 = vmatpush.msra.mxu2 %v374_v63  ;;  %v386_v8 = vld [vmem:[%s990_s5 + $0xc8] sm:$0xff] }
  0x36   :  { %247 = vmatpush.msrb.mxu0 %v222_v11  ;;  %415 = vmatpush.msra.mxu3 %v390_v0  ;;  %v385_v11 = vld [vmem:[%s990_s5 + $0xc0] sm:$0xff] }
  0x37   :  { %266 = vmatpush.msrb.mxu1 %v239_v10  ;;  %396 = vmatpush.msra.mxu2 %v373_v1  ;;  %v369_v10 = vld [vmem:[%s990_s5 + $0x40] sm:$0xff] }
  0x38   :  { %248 = vmatpush.msrb.mxu0 %v221_v13  ;;  %416 = vmatpush.msra.mxu3 %v389_v2  ;;  %v384_v13 = vld [vmem:[%s990_s5 + $0xb8] sm:$0xff] }
  0x39   :  { %267 = vmatpush.msrb.mxu1 %v238_v12  ;;  %397 = vmatpush.msra.mxu2 %v372_v3  ;;  %v368_v12 = vld [vmem:[%s990_s5 + $0x38] sm:$0xff] }
  0x3a   :  { %249 = vmatpush.msrb.mxu0 %v220_v15  ;;  %417 = vmatpush.msra.mxu3 %v388_v4  ;;  %v383_v15 = vld [vmem:[%s990_s5 + $0xb0] sm:$0xff] }
  0x3b   :  { %268 = vmatpush.msrb.mxu1 %v237_v14  ;;  %398 = vmatpush.msra.mxu2 %v371_v5  ;;  %v367_v14 = vld [vmem:[%s990_s5 + $0x30] sm:$0xff] }
  0x3c   :  { %250 = vmatpush.msrb.mxu0 %v219_v17  ;;  %418 = vmatpush.msra.mxu3 %v387_v6  ;;  %v382_v17 = vld [vmem:[%s990_s5 + $0xa8] sm:$0xff] }
  0x3d   :  { %269 = vmatpush.msrb.mxu1 %v236_v16  ;;  %399 = vmatpush.msra.mxu2 %v370_v7  ;;  %v366_v16 = vld [vmem:[%s990_s5 + $0x28] sm:$0xff] }
  0x3e   :  { %251 = vmatpush.msrb.mxu0 %v218_v19  ;;  %419 = vmatpush.msra.mxu3 %v386_v8 }
  0x3f   :  { %270 = vmatpush.msrb.mxu1 %v235_v18  ;;  %400 = vmatpush.msra.mxu2 %v369_v10 }
  0x40   :  { %252 = vmatpush.msrb.mxu0 %v217_v21  ;;  %420 = vmatpush.msra.mxu3 %v385_v11  ;;  %v381_v21 = vld [vmem:[%s990_s5 + $0xa0] sm:$0xff] }
  0x41   :  { %271 = vmatpush.msrb.mxu1 %v234_v20  ;;  %401 = vmatpush.msra.mxu2 %v368_v12  ;;  %v365_v20 = vld [vmem:[%s990_s5 + $0x20] sm:$0xff] }
  0x42   :  { %253 = vmatpush.msrb.mxu0 %v216_v23  ;;  %421 = vmatpush.msra.mxu3 %v384_v13  ;;  %v364_v23 = vld [vmem:[%s990_s5 + $0x18] sm:$0xff] }
  0x43   :  { %272 = vmatpush.msrb.mxu1 %v233_v22  ;;  %402 = vmatpush.msra.mxu2 %v367_v14 }
  0x44   :  { %254 = vmatpush.msrb.mxu0 %v215_v25  ;;  %422 = vmatpush.msra.mxu3 %v383_v15 }
  0x45   :  { %273 = vmatpush.msrb.mxu1 %v232_v24  ;;  %403 = vmatpush.msra.mxu2 %v366_v16  ;;  %v380_v24 = vld [vmem:[%s990_s5 + $0x98] sm:$0xff] }
  0x46   :  { %255 = vmatpush.msrb.mxu0 %v214_v27  ;;  %423 = vmatpush.msra.mxu3 %v382_v17 }
  0x47   :  { %274 = vmatpush.msrb.mxu1 %v231_v26  ;;  %404 = vmatpush.msra.mxu2 %v365_v20 }
  0x48   :  { %256 = vmatpush.msrb.mxu0 %v213_v29  ;;  %424 = vmatpush.msra.mxu3 %v381_v21  ;;  %v379_v29 = vld [vmem:[%s990_s5 + $0x90] sm:$0xff] }
  0x49   :  { %275 = vmatpush.msrb.mxu1 %v230_v28  ;;  %v363_v28 = vld [vmem:[%s990_s5 + $0x10] sm:$0xff]  ;;  %405 = vmatpush.msra.mxu2 %v364_v23 }
  0x4a   :  { %257 = vmatpush.msrb.mxu0 %v212_v31  ;;  %425 = vmatpush.msra.mxu3 %v380_v24 }
  0x4b   :  { %276 = vmatpush.msrb.mxu1 %v229_v30  ;;  %406 = vmatpush.msra.mxu2 %v363_v28 }
  0x4c   :  { %258 = vmatpush.msrb.mxu0 %v211_v33  ;;  %426 = vmatpush.msra.mxu3 %v379_v29 }
  0x4d   :  { %277 = vmatpush.msrb.mxu1 %v228_v32  ;;  %407 = vmatpush.msra.mxu2 %v362_v35 }
  0x4f   :  { %278 = vmatpush.msrb.mxu1 %v227_v34 }
  0xaa   :  { %v146_v37 = vpop.f32.mrf.mxu0 }
  0xab   :  { %v147_v38 = vadd.f32 %v146_v37, %v119_v36  ;;  %v378_v36 = vld [vmem:[%s990_s5 + $0x88] sm:$0xff]  ;;  %v361_v37 = vld [vmem:[%s990_s5] sm:$0xff] }
  0xac   :  { %427 = vmatpush.msra.mxu3 %v378_v36  ;;  %408 = vmatpush.msra.mxu2 %v361_v37 }
  0xad   :  { %v166_v40 = vpop.f32.mrf.mxu1 }
  0xae   :  { %v167_v41 = vadd.f32 %v166_v40, %v147_v38  ;;  %v186_v42 = vpop.f32.mrf.mxu2  ;;  %v377_v38 = vld [vmem:[%s990_s5 + $0x80] sm:$0xff]  ;;  %v356_v40 = vld.sshfl [vmem:[#allocation1 + $0x8] sm:$0xff pattern:$0x73625140] }
  0xaf   :  { %v206_v43 = vpop.f32.mrf.mxu3  ;;  %v187_v44 = vadd.f32 %v186_v42, %v120_v39  ;;  %428 = vmatpush.msra.mxu3 %v377_v38  ;;  %v355_v39 = vld.sshfl [vmem:[#allocation1] sm:$0xff pattern:$0x73625140] }
  0xb0   :  { %458 = vtanh.f32 %v167_v41 }
  0xb1   :  { %v207_v45 = vadd.f32 %v206_v43, %v187_v44 }
  0xb3   :  { %460 = vtanh.f32 %v207_v45 }
  0xb6   :  { %v459_v46 = vpop.eup %458 }
  0xb7   :  { %259 = vmatmul.f32.vlgmr.msrb.gmra.mxu0 %v459_v46 }
  0xb9   :  { %v461_v47 = vpop.eup %460 }
  0xba   :  { %279 = vmatmul.f32.vlgmr.msrb.gmra.mxu1 %v461_v47 }
 0x134   :  { %v260_v48 = vpop.f32.mrf.mxu0 }
 0x137   :  { %v280_v49 = vpop.f32.mrf.mxu1 }
 0x138   :  { %v281_v50 = vadd.f32 %v280_v49, %v260_v48 }
 0x13a   :  { %v284_v51 = vsel %vm283_vm0, %v281_v50, -inf }
 0x13b   :  { %285 = vmax.xlane.f32.xlu0 %v284_v51 }
 0x1ae   :  { %v286_v52 = vpop.xlane.xlu0 %285 }
 0x1af   :  { %v287_v53 = vsub.f32 %v281_v50, %v286_v52 }
 0x1b1   :  { %v288_v54 = vmul.f32 1.442695, %v287_v53 }
 0x1b3   :  { %462 = vpow2.f32 %v288_v54 }
 0x1b9   :  { %v876_v55 = vpop.eup %462 }
 0x1ba   :  { %v290_v56 = vsel %vm283_vm0, %v876_v55, 0.0 }
 0x1bb   :  { %291 = vadd.xlane.f32.xlu0 %v290_v56 }
 0x22e   :  { %v292_v9 = vpop.xlane.xlu0 %291 }
 0x22f   :  { %464 = vrcp.f32 %v292_v9  ;;  %v304_v25 = vand.u32 2147483648, %v292_v9  ;;  %v302_v27 = vand.u32 2147483647, %v292_v9  ;;  %vm298_vm2 = vweird.f32 %v292_v9 }
 0x231   :  { %v305_v31 = vor.u32 1.1754944e-38, %v304_v25  ;;  %vm303_vm4 = vcmp.eq.f32.partialorder %v302_v27, 8.507059e+37 }
 0x235   :  { %v465_v18 = vpop.eup %464 }
 0x236   :  { %v294_v19 = vmul.f32 %v465_v18, %v292_v9  ;;  %vm299_vm1 = vweird.f32 %v465_v18 }
 0x237   :  { %vm300_vm3 = vmor %vm298_vm2, %vm299_vm1 }
 0x238   :  { %v295_v22 = vsub.f32 1.0, %v294_v19 }
 0x23a   :  { %v296_v26 = vmul.f32 %v465_v18, %v295_v22 }
 0x23c   :  { %v297_v30 = vadd.f32 %v465_v18, %v296_v26 }
 0x23e   :  { %v301_v32 = vsel %vm300_vm3, %v465_v18, %v297_v30 }
 0x23f   :  { %v306_v33 = vsel %vm303_vm4, %v305_v31, %v301_v32 }
 0x240   :  { %v307_v34 = vmul.f32 %v876_v55, %v306_v33 }
 0x242   :  { %453 = vmatmul.msk.f32.vlgmr.msrb.gmra.mxu2 %vm310_vm5, %v307_v34  ;;  %454 = vmatmul.msk.f32.vlgmr.msrb.gmra.mxu3 %vm310_vm5, %v307_v34 }
 0x2c5   :  { %v331_v41 = vpop.f32.mrf.mxu2  ;;  %v351_v42 = vpop.f32.mrf.mxu3 }
 0x2c6   :  { %v359_v43 = vmul.f32 %v355_v39, %v331_v41  ;;  %v360_v44 = vmul.f32 %v356_v40, %v351_v42 }
 0x2c8   :  { %409 = vmatmul.f32.vlgmr.msra.gmra.mxu2 %v359_v43  ;;  %429 = vmatmul.f32.vlgmr.msra.gmra.mxu3 %v360_v44 }
 0x34b   :  { %v410_v45 = vpop.f32.mrf.mxu2  ;;  %v430_v46 = vpop.f32.mrf.mxu3 }
 0x34c   :  { %v431_v47 = vadd.f32 %v430_v46, %v410_v45 }
 0x34e   :  { %434 = vst.msk [vmem:[#allocation7] sm:$0x3] %vm433_vm6, %v431_v47 }
 0x34f   :  { %445 = dma.vmem_to_hbm [thread:$0]  %s441_s22, 32, %s443_s24, [#allocation4]  }
 0x350   :  { %542 = dma.done.wait [#allocation4], 32  }
 0x351   :  { %543 = vsyncadd [#allocation4], 4294967264 }
 0x352   :  { %450 = vsyncpa [#allocation3], 1 }
 0x353   :  { %451 = vsyncpa [#allocation6], 1 }
 0x354   :  { %452 = vsyncpa [#allocation4], 1 }

</bundles_post_ra>
